<compile_context>
chip_gen: v7x
topology: tpu7x:2x2x1
jax: 0.10.0
libtpu: 0.0.40
codegen_flags: <defaults>
</compile_context>

<pallas_src>
import jax
import jax.numpy as jnp
from jax.experimental import pallas as pl
from jax.experimental.pallas import tpu as pltpu


def _combined_kernel(x_ref, w1c_ref, b1c_ref, w2c_ref, b2c_ref, out_ref):
    """Fused forward for both heads.

    h   = relu(x @ [W1_1 | W1_2] + [b1_1 | b1_2])          # [B, 2H]
    out = h @ blockdiag(W2_1p, W2_2p) + [b2_1p | b2_2p]    # [B, 2*Ppad]
    (pred1 = out[:, :Ppad], pred2 = out[:, Ppad:]; off-diag blocks are zero)
    """
    x = x_ref[...]                                                  # [B, D]
    h = jnp.dot(x, w1c_ref[...], preferred_element_type=jnp.float32)
    h = jnp.maximum(h + b1c_ref[...], 0.0)                          # [B, 2H]

    out = jnp.dot(h, w2c_ref[...], preferred_element_type=jnp.float32) + b2c_ref[...]
    out_ref[...] = out.astype(out_ref.dtype)                        # lane-dense [B, 2*Ppad]


def combined_model(x_nchw, params1, params2):
    """CombinedModel.forward: returns (pred1, pred2). Single fused pallas_call."""
    B = x_nchw.shape[0]
    x_flat = x_nchw.reshape(B, -1)                                  # flatten NCHW row-major

    w1_1, b1_1, w2_1, b2_1 = params1
    w1_2, b1_2, w2_2, b2_2 = params2
    D, H = w1_1.shape
    P = w2_1.shape[1]
    LANE = 128
    Ppad = ((P + LANE - 1) // LANE) * LANE                          # lane-dense head width

    # Pack layer 1: one [D, 2H] matmul feeds both heads (N=256 fills v6e/v7x MXU).
    w1c = jnp.concatenate([w1_1, w1_2], axis=1)                     # [D, 2H]
    b1c = jnp.concatenate([b1_1, b1_2], axis=0).reshape(1, 2 * H)   # [1, 2H]

    # Pack layer 2 block-diagonally: [2H, 2*Ppad]; zero pads keep numerics exact.
    w2c = jnp.zeros((2 * H, 2 * Ppad), jnp.float32)
    w2c = w2c.at[:H, :P].set(w2_1)
    w2c = w2c.at[H:, Ppad:Ppad + P].set(w2_2)
    b2c = jnp.zeros((1, 2 * Ppad), jnp.float32)
    b2c = b2c.at[0, :P].set(b2_1)
    b2c = b2c.at[0, Ppad:Ppad + P].set(b2_2)

    flops = 2 * B * D * (2 * H) + 2 * B * (2 * H) * (2 * Ppad)
    bytes_accessed = 4 * (B * D + D * 2 * H + 2 * H
                          + 2 * H * 2 * Ppad + 2 * Ppad + B * 2 * Ppad)

    full = lambda shape: pl.BlockSpec(shape, lambda s=shape: tuple(0 for _ in s))

    out = pl.pallas_call(
        _combined_kernel,
        out_shape=jax.ShapeDtypeStruct((B, 2 * Ppad), jnp.float32),
        grid_spec=pltpu.PrefetchScalarGridSpec(
            num_scalar_prefetch=0,
            grid=(),
            in_specs=[
                full((B, D)),
                full((D, 2 * H)),
                full((1, 2 * H)),
                full((2 * H, 2 * Ppad)),
                full((1, 2 * Ppad)),
            ],
            out_specs=full((B, 2 * Ppad)),
        ),
        cost_estimate=pl.CostEstimate(
            flops=flops, transcendentals=0, bytes_accessed=bytes_accessed),
    )(x_flat, w1c, b1c, w2c, b2c)

    return out[:, :P], out[:, Ppad:Ppad + P]


def init_head_params(key, in_features, hidden, num_classes):
    k1, k2, k3, k4 = jax.random.split(key, 4)
    scale1 = 1.0 / jnp.sqrt(in_features)
    scale2 = 1.0 / jnp.sqrt(hidden)
    w1 = jax.random.uniform(k1, (in_features, hidden), jnp.float32, -scale1, scale1)
    b1 = jax.random.uniform(k2, (hidden,), jnp.float32, -scale1, scale1)
    w2 = jax.random.uniform(k3, (hidden, num_classes), jnp.float32, -scale2, scale2)
    b2 = jax.random.uniform(k4, (num_classes,), jnp.float32, -scale2, scale2)
    return w1, b1, w2, b2


def _reference(x_nchw, params1, params2):
    """Pure-JAX reference for correctness check."""
    def head(xf, w1, b1, w2, b2):
        emb = jnp.maximum(xf @ w1 + b1, 0.0)
        return emb @ w2 + b2
    xf = x_nchw.reshape(x_nchw.shape[0], -1)
    return head(xf, *params1), head(xf, *params2)


if __name__ == "__main__":
    B, C, Hs, Ws = 2, 4, 16, 16            # NCHW input
    D = C * Hs * Ws                        # 1024 flattened features
    HIDDEN = 128
    NUM_CLASSES = 10

    key = jax.random.PRNGKey(0)
    kx, k1, k2 = jax.random.split(key, 3)
    x = jax.random.normal(kx, (B, C, Hs, Ws), jnp.float32)

    params1 = init_head_params(k1, D, HIDDEN, NUM_CLASSES)   # model1 weights
    params2 = init_head_params(k2, D, HIDDEN, NUM_CLASSES)   # model2 weights

    pred1, pred2 = combined_model(x, params1, params2)
    jax.block_until_ready((pred1, pred2))

    ref1, ref2 = _reference(x, params1, params2)
    assert pred1.shape == (B, NUM_CLASSES) and pred2.shape == (B, NUM_CLASSES)
    assert jnp.allclose(pred1, ref1, atol=1e-4, rtol=1e-4)
    assert jnp.allclose(pred2, ref2, atol=1e-4, rtol=1e-4)

    print("KERNEL_OK")
</pallas_src>

<mosaic_0001>
module attributes {stable_mosaic.version = 11 : i64} {
  func.func @_combined_kernel(%arg0: memref<2x1024xf32, #tpu.memory_space<vmem>>, %arg1: memref<1024x256xf32, #tpu.memory_space<vmem>>, %arg2: memref<1x256xf32, #tpu.memory_space<vmem>>, %arg3: memref<256x256xf32, #tpu.memory_space<vmem>>, %arg4: memref<1x256xf32, #tpu.memory_space<vmem>>, %arg5: memref<2x256xf32, #tpu.memory_space<vmem>>) attributes {dimension_semantics = [], scalar_prefetch = 0 : i64, scratch_operands = 0 : i64, tpu.core_type = #tpu.core_type<tc>} {
    %c0 = arith.constant 0 : index
    %c0_0 = arith.constant 0 : index
    %0 = vector.load %arg0[%c0, %c0_0] : memref<2x1024xf32, #tpu.memory_space<vmem>>, vector<2x1024xf32>
    %c0_1 = arith.constant 0 : index
    %c0_2 = arith.constant 0 : index
    %1 = vector.load %arg1[%c0_1, %c0_2] : memref<1024x256xf32, #tpu.memory_space<vmem>>, vector<1024x256xf32>
    %cst = arith.constant dense<0.000000e+00> : vector<2x256xf32>
    %2 = tpu.matmul %0, %1, %cst {dimension_numbers = #tpu.dot_dimension_numbers<[1], [0], [0], [1], [0, 0, 1, 1], [], []>} : vector<2x1024xf32>, vector<1024x256xf32>, vector<2x256xf32> -> vector<2x256xf32>
    %c0_3 = arith.constant 0 : index
    %c0_4 = arith.constant 0 : index
    %3 = vector.load %arg2[%c0_3, %c0_4] : memref<1x256xf32, #tpu.memory_space<vmem>>, vector<1x256xf32>
    %4 = vector.broadcast %3 : vector<1x256xf32> to vector<2x256xf32>
    %5 = arith.addf %2, %4 : vector<2x256xf32>
    %cst_5 = arith.constant 0.000000e+00 : f32
    %6 = vector.broadcast %cst_5 : f32 to vector<2x256xf32>
    %7 = arith.maximumf %5, %6 : vector<2x256xf32>
    %c0_6 = arith.constant 0 : index
    %c0_7 = arith.constant 0 : index
    %8 = vector.load %arg3[%c0_6, %c0_7] : memref<256x256xf32, #tpu.memory_space<vmem>>, vector<256x256xf32>
    %cst_8 = arith.constant dense<0.000000e+00> : vector<2x256xf32>
    %9 = tpu.matmul %7, %8, %cst_8 {dimension_numbers = #tpu.dot_dimension_numbers<[1], [0], [0], [1], [0, 0, 1, 1], [], []>} : vector<2x256xf32>, vector<256x256xf32>, vector<2x256xf32> -> vector<2x256xf32>
    %c0_9 = arith.constant 0 : index
    %c0_10 = arith.constant 0 : index
    %10 = vector.load %arg4[%c0_9, %c0_10] : memref<1x256xf32, #tpu.memory_space<vmem>>, vector<1x256xf32>
    %11 = vector.broadcast %10 : vector<1x256xf32> to vector<2x256xf32>
    %12 = arith.addf %9, %11 : vector<2x256xf32>
    %c0_11 = arith.constant 0 : index
    %c0_12 = arith.constant 0 : index
    %13 = vector.load %arg5[%c0_11, %c0_12] : memref<2x256xf32, #tpu.memory_space<vmem>>, vector<2x256xf32>
    tpu.vector_store %arg5[%c0_11, %c0_12], %12 {strides = array<i32>} : memref<2x256xf32, #tpu.memory_space<vmem>>, vector<2x256xf32>,
    return
  }
}

</mosaic_0001>

<bundles_post_ra>
// kernel: tpu_custom_call.1
= control target key start
LH: loop header
LB: loop body
LE: loop exit
PB: predicated region body
PF: predicated region fallthrough
CT: control target
= control target key end

     0   :  { %10 = vsyncpa [#allocation3], 0  ;;  %s1405_s0 = inlined_call_operand.hbm [shape: f32[2,1024], index: 0, kind: input, shape index: {}]   ;;  %s1406_s1 = inlined_call_operand.hbm [shape: f32[1024,256], index: 1, kind: input, shape index: {}]   ;;  %s1407_s2 = inlined_call_operand.vmem [shape: f32[1,256], index: 2, kind: input, shape index: {}]   ;;  %s1408_s3 = inlined_call_operand.hbm [shape: f32[256,256], index: 3, kind: input, shape index: {}]   ;;  %s1409_s4 = inlined_call_operand.vmem [shape: f32[1,256], index: 4, kind: input, shape index: {}]   ;;  %s1410_s5 = inlined_call_operand.hbm [shape: f32[2,256], index: 5, kind: output, shape index: {}]  }
   0x1   :  { %11 = vsyncpa [#allocation6], 0 }
   0x2   :  { %12 = vsyncpa [#allocation4], 0  ;;  %s1267_s18 = smov [#allocation5]   ;;  %s1173_s22 = scalar_lea.hbm %s1406_s1, 32768 }
   0x3   :  { %s28_s19 = sshll.u32 %s1267_s18, 4  ;;  %p1174_p0 = scmp.ne.s32.totalorder %s1406_s1, %s1173_s22  ;;  %s29_s19 = int_to_ptr.vmem [resolvable:$true] %s28_s19 }
   0x4   :  { %p1177_p1 = scmp.lt.u32.totalorder %s1173_s22, %s1406_s1 }
   0x6   :  { %p1179_p2 = pnand %p1177_p1, %p1174_p0 }
   0x8   :  { %1182 = shalt.err (!%p1179_p2)
}
   0x9   :  { %s1183_s27 = scalar_lea.vmem %s29_s19, 32768  ;;  %p1188_p4 = scmp.lt.s32.totalorder %s29_s19, %s29_s19 }
   0xa   :  { %p1184_p3 = scmp.ne.s32.totalorder %s29_s19, %s1183_s27  ;;  %p1189_p5 = scmp.lt.s32.totalorder %s1183_s27, %s1183_s27 }
   0xc   :  { %p1190_p6 = por %p1189_p5, %p1188_p4 }
   0xe   :  { %p1191_p7 = pnand %p1190_p6, %p1184_p3 }
  0x10   :  { %1194 = shalt.err (!%p1191_p7)
}
  0x11   :  { %s1268_s28 = smov 256   ;;  %s1269_s29 = smov 16  }
  0x12   :  { %34 = dma.hbm_to_vmem [thread:$0]  %s1406_s1, 32768, %s29_s19, [#allocation6], %s1268_s28, %s1268_s28, %s1269_s29  }
  0x13   :  { %s1270_s7 = smov [#allocation2]   ;;  %s1271_s9 = smov [#allocation7]  }
  0x14   :  { %s19_s8 = sshll.u32 %s1270_s7, 4  ;;  %s42_s10 = sshll.u32 %s1271_s9, 4  ;;  %s20_s8 = int_to_ptr.vmem [resolvable:$true] %s19_s8  ;;  %s43_s10 = int_to_ptr.vmem [resolvable:$true] %s42_s10 }
  0x15   :  { %s1195_s13 = scalar_lea.hbm %s1405_s0, 256 }
  0x16   :  { %p1196_p8 = scmp.ne.s32.totalorder %s1405_s0, %s1195_s13  ;;  %p1199_p9 = scmp.lt.u32.totalorder %s1195_s13, %s1405_s0 }
  0x18   :  { %p1201_p10 = pnand %p1199_p9, %p1196_p8 }
  0x1a   :  { %1204 = shalt.err (!%p1201_p10)
}
  0x1b   :  { %s1205_s1 = scalar_lea.vmem %s20_s8, 256  ;;  %p1210_p12 = scmp.lt.s32.totalorder %s20_s8, %s20_s8 }
  0x1c   :  { %p1206_p11 = scmp.ne.s32.totalorder %s20_s8, %s1205_s1  ;;  %p1211_p13 = scmp.lt.s32.totalorder %s1205_s1, %s1205_s1 }
  0x1e   :  { %p1212_p0 = por %p1211_p13, %p1210_p12 }
  0x20   :  { %p1213_p1 = pnand %p1212_p0, %p1206_p11 }
  0x22   :  { %1216 = shalt.err (!%p1213_p1)
}
  0x23   :  { %22 = dma.hbm_to_vmem [thread:$0]  %s1405_s0, 256, %s20_s8, [#allocation3]  }
  0x24   :  { %s1217_s22 = scalar_lea.hbm %s1408_s3, 8192 }
  0x25   :  { %p1218_p2 = scmp.ne.s32.totalorder %s1408_s3, %s1217_s22  ;;  %p1221_p3 = scmp.lt.u32.totalorder %s1217_s22, %s1408_s3 }
  0x27   :  { %p1223_p4 = pnand %p1221_p3, %p1218_p2 }
  0x29   :  { %1226 = shalt.err (!%p1223_p4)
}
  0x2a   :  { %s1227_s27 = scalar_lea.vmem %s43_s10, 8192  ;;  %p1232_p6 = scmp.lt.s32.totalorder %s43_s10, %s43_s10 }
  0x2b   :  { %p1228_p5 = scmp.ne.s32.totalorder %s43_s10, %s1227_s27  ;;  %p1233_p7 = scmp.lt.s32.totalorder %s1227_s27, %s1227_s27 }
  0x2d   :  { %p1234_p8 = por %p1233_p7, %p1232_p6 }
  0x2f   :  { %p1235_p9 = pnand %p1234_p8, %p1228_p5 }
  0x31   :  { %1238 = shalt.err (!%p1235_p9)
}
  0x32   :  { %48 = dma.hbm_to_vmem [thread:$0]  %s1408_s3, 8192, %s43_s10, [#allocation6], %s1268_s28, %s1268_s28, %s1269_s29  }
  0x33   :  { %1261 = dma.done.wait [#allocation3], 256  }
  0x34   :  { %1262 = vsyncadd [#allocation3], 4294967040 }
  0x35   :  { %1263 = dma.done.wait [#allocation6], 40960  }
  0x36   :  { %1264 = vsyncadd [#allocation6], 4294926336  ;;  %v127_v0 = vld [vmem:[#allocation5 + $0x208] sm:$0xff]  ;;  %v129_v1 = vld [vmem:[#allocation5 + $0x218] sm:$0xff]  ;;  %v320_v26 = vlaneseq  ;;  %v1272_v27 = vmov 1983009808  }
  0x37   :  { %v126_v2 = vld [vmem:[#allocation5 + $0x200] sm:$0xff]  ;;  %v900_v3 = vpack.c.bf16 %v129_v1, %v127_v0  ;;  %v128_v4 = vld [vmem:[#allocation5 + $0x210] sm:$0xff]  ;;  %v131_v5 = vld [vmem:[#allocation5 + $0x228] sm:$0xff]  ;;  %v334_v28 = vunpack.c.l.s4 %v1272_v27 }
  0x38   :  { %v133_v6 = vld [vmem:[#allocation5 + $0x238] sm:$0xff]  ;;  %v902_v7 = vpack.c.bf16 %v128_v4, %v126_v2  ;;  %v130_v9 = vld [vmem:[#allocation5 + $0x220] sm:$0xff]  ;;  %v132_v10 = vld [vmem:[#allocation5 + $0x230] sm:$0xff]  ;;  %v1346_v35 = vshrl.u32 %v320_v26, 7 }
  0x39   :  { %v904_v8 = vpack.c.bf16 %v133_v6, %v131_v5  ;;  %v135_v11 = vld [vmem:[#allocation5 + $0x248] sm:$0xff]  ;;  %901 = vmatprep.subr.bf16.mxu0 %v900_v3  ;;  %v137_v12 = vld [vmem:[#allocation5 + $0x258] sm:$0xff]  ;;  %v906_v13 = vpack.c.bf16 %v132_v10, %v130_v9  ;;  %v134_v15 = vld [vmem:[#allocation5 + $0x240] sm:$0xff]  ;;  %v335_v36 = vunpack.c.0.s8 %v334_v28 }
  0x3a   :  { %903 = vmatpush1.bf16.msra.mxu0 %v902_v7  ;;  %v908_v14 = vpack.c.bf16 %v137_v12, %v135_v11  ;;  %v136_v16 = vld [vmem:[#allocation5 + $0x250] sm:$0xff]  ;;  %v139_v17 = vld [vmem:[#allocation5 + $0x268] sm:$0xff]  ;;  %v141_v18 = vld [vmem:[#allocation5 + $0x278] sm:$0xff] }
  0x3b   :  { %905 = vmatprep.subr.bf16.mxu0 %v904_v8  ;;  %v910_v19 = vpack.c.bf16 %v136_v16, %v134_v15  ;;  %v912_v20 = vpack.c.bf16 %v141_v18, %v139_v17  ;;  %v138_v21 = vld [vmem:[#allocation5 + $0x260] sm:$0xff]  ;;  %v140_v22 = vld [vmem:[#allocation5 + $0x270] sm:$0xff]  ;;  %v143_v23 = vld [vmem:[#allocation5 + $0x288] sm:$0xff]  ;;  %v1349_v43 = vsub.s32 %v335_v36, %v1346_v35 }
  0x3c   :  { %v145_v24 = vld [vmem:[#allocation5 + $0x298] sm:$0xff]  ;;  %v914_v25 = vpack.c.bf16 %v140_v22, %v138_v21  ;;  %v142_v30 = vld [vmem:[#allocation5 + $0x280] sm:$0xff]  ;;  %v144_v31 = vld [vmem:[#allocation5 + $0x290] sm:$0xff] }
  0x3d   :  { %v916_v29 = vpack.c.bf16 %v145_v24, %v143_v23  ;;  %v147_v32 = vld [vmem:[#allocation5 + $0x2a8] sm:$0xff]  ;;  %v149_v33 = vld [vmem:[#allocation5 + $0x2b8] sm:$0xff]  ;;  %v918_v34 = vpack.c.bf16 %v144_v31, %v142_v30  ;;  %v146_v38 = vld [vmem:[#allocation5 + $0x2a0] sm:$0xff] }
  0x3e   :  { %907 = vmatpush1.bf16.msra.mxu0 %v906_v13  ;;  %v920_v37 = vpack.c.bf16 %v149_v33, %v147_v32  ;;  %v148_v39 = vld [vmem:[#allocation5 + $0x2b0] sm:$0xff]  ;;  %v151_v40 = vld [vmem:[#allocation5 + $0x2c8] sm:$0xff]  ;;  %v153_v41 = vld [vmem:[#allocation5 + $0x2d8] sm:$0xff] }
  0x3f   :  { %909 = vmatprep.subr.bf16.mxu0 %v908_v14  ;;  %v922_v42 = vpack.c.bf16 %v148_v39, %v146_v38  ;;  %v924_v44 = vpack.c.bf16 %v153_v41, %v151_v40  ;;  %v150_v45 = vld [vmem:[#allocation5 + $0x2c0] sm:$0xff]  ;;  %v152_v46 = vld [vmem:[#allocation5 + $0x2d0] sm:$0xff]  ;;  %v155_v48 = vld [vmem:[#allocation5 + $0x2e8] sm:$0xff] }
  0x40   :  { %v1351_v47 = vld [vmem:[#allocation2] sm:$0xff]  ;;  %v157_v49 = vld [vmem:[#allocation5 + $0x2f8] sm:$0xff]  ;;  %v926_v51 = vpack.c.bf16 %v152_v46, %v150_v45  ;;  %v154_v54 = vld [vmem:[#allocation5 + $0x2e0] sm:$0xff] }
  0x41   :  { %v332_v50 = vcombine.high %v1351_v47, %v1351_v47  ;;  %v928_v53 = vpack.c.bf16 %v157_v49, %v155_v48  ;;  %v156_v55 = vld [vmem:[#allocation5 + $0x2f0] sm:$0xff]  ;;  %v159_v56 = vld [vmem:[#allocation5 + $0x308] sm:$0xff]  ;;  %v161_v57 = vld [vmem:[#allocation5 + $0x318] sm:$0xff] }
  0x42   :  { %911 = vmatpush1.bf16.msra.mxu0 %v910_v19  ;;  %v930_v59 = vpack.c.bf16 %v156_v55, %v154_v54  ;;  %v932_v60 = vpack.c.bf16 %v161_v57, %v159_v56  ;;  %v158_v61 = vld [vmem:[#allocation5 + $0x300] sm:$0xff]  ;;  %v160_v62 = vld [vmem:[#allocation5 + $0x310] sm:$0xff]  ;;  %v163_v63 = vld [vmem:[#allocation5 + $0x328] sm:$0xff] }
  0x43   :  { %913 = vmatprep.subr.bf16.mxu0 %v912_v20  ;;  %v1356_v52 = vrot.slane %v332_v50, %v1349_v43  ;;  %v165_v0 = vld [vmem:[#allocation5 + $0x338] sm:$0xff]  ;;  %v934_v1 = vpack.c.bf16 %v160_v62, %v158_v61  ;;  %v162_v3 = vld [vmem:[#allocation5 + $0x320] sm:$0xff]  ;;  %v164_v4 = vld [vmem:[#allocation5 + $0x330] sm:$0xff] }
  0x44   :  { %v936_v2 = vpack.c.bf16 %v165_v0, %v163_v63  ;;  %v167_v5 = vld [vmem:[#allocation5 + $0x348] sm:$0xff]  ;;  %v169_v6 = vld [vmem:[#allocation5 + $0x358] sm:$0xff]  ;;  %v938_v7 = vpack.c.bf16 %v164_v4, %v162_v3  ;;  %v166_v9 = vld [vmem:[#allocation5 + $0x340] sm:$0xff] }
  0x45   :  { %v348_v58 = vcombine.high %v1356_v52, %v1356_v52  ;;  %v940_v8 = vpack.c.bf16 %v169_v6, %v167_v5  ;;  %v168_v10 = vld [vmem:[#allocation5 + $0x350] sm:$0xff]  ;;  %v171_v11 = vld [vmem:[#allocation5 + $0x368] sm:$0xff]  ;;  %v173_v12 = vld [vmem:[#allocation5 + $0x378] sm:$0xff] }
  0x46   :  { %915 = vmatpush1.bf16.msra.mxu0 %v914_v25  ;;  %v942_v13 = vpack.c.bf16 %v168_v10, %v166_v9  ;;  %v944_v14 = vpack.c.bf16 %v173_v12, %v171_v11  ;;  %v170_v15 = vld [vmem:[#allocation5 + $0x360] sm:$0xff]  ;;  %v172_v16 = vld [vmem:[#allocation5 + $0x370] sm:$0xff]  ;;  %v175_v17 = vld [vmem:[#allocation5 + $0x388] sm:$0xff] }
  0x47   :  { %917 = vmatprep.subr.bf16.mxu0 %v916_v29  ;;  %509 = vmatprep.mubr.f32.mxu0 %v348_v58  ;;  %v177_v18 = vld [vmem:[#allocation5 + $0x398] sm:$0xff]  ;;  %v63_v19 = vld [vmem:[#allocation5 + $0x8] sm:$0xff]  ;;  %v62_v22 = vld [vmem:[#allocation5] sm:$0xff]  ;;  %v946_v23 = vpack.c.bf16 %v172_v16, %v170_v15  ;;  %v1364_v16 = vrot.slane %v1351_v47, %v1349_v43 }
  0x48   :  { %v65_v20 = vld [vmem:[#allocation5 + $0x18] sm:$0xff]  ;;  %v174_v24 = vld [vmem:[#allocation5 + $0x380] sm:$0xff]  ;;  %v64_v25 = vld [vmem:[#allocation5 + $0x10] sm:$0xff]  ;;  %v948_v26 = vpack.c.bf16 %v177_v18, %v175_v17 }
  0x49   :  { %v836_v21 = vpack.c.bf16 %v65_v20, %v63_v19  ;;  %v176_v27 = vld [vmem:[#allocation5 + $0x390] sm:$0xff]  ;;  %v838_v28 = vpack.c.bf16 %v64_v25, %v62_v22  ;;  %v67_v29 = vld [vmem:[#allocation5 + $0x28] sm:$0xff]  ;;  %v69_v30 = vld [vmem:[#allocation5 + $0x38] sm:$0xff] }
  0x4a   :  { %919 = vmatpush1.bf16.msra.mxu0 %v918_v34  ;;  %v179_v31 = vld [vmem:[#allocation5 + $0x3a8] sm:$0xff]  ;;  %v181_v32 = vld [vmem:[#allocation5 + $0x3b8] sm:$0xff]  ;;  %v840_v33 = vpack.c.bf16 %v69_v30, %v67_v29  ;;  %v66_v34 = vld [vmem:[#allocation5 + $0x20] sm:$0xff] }
  0x4b   :  { %921 = vmatprep.subr.bf16.mxu0 %v920_v37  ;;  %837 = vmatprep.subr.bf16.mxu1 %v836_v21  ;;  %v68_v36 = vld [vmem:[#allocation5 + $0x30] sm:$0xff]  ;;  %v950_v37 = vpack.c.bf16 %v176_v27, %v174_v24  ;;  %v178_v38 = vld [vmem:[#allocation5 + $0x3a0] sm:$0xff]  ;;  %v71_v40 = vld [vmem:[#allocation5 + $0x48] sm:$0xff] }
  0x4c   :  { %839 = vmatpush1.bf16.msra.mxu1 %v838_v28  ;;  %v842_v39 = vpack.c.bf16 %v68_v36, %v66_v34  ;;  %v73_v41 = vld [vmem:[#allocation5 + $0x58] sm:$0xff]  ;;  %v70_v46 = vld [vmem:[#allocation5 + $0x40] sm:$0xff]  ;;  %v72_v48 = vld [vmem:[#allocation5 + $0x50] sm:$0xff] }
  0x4d   :  { %841 = vmatprep.subr.bf16.mxu1 %v840_v33  ;;  %v844_v45 = vpack.c.bf16 %v73_v41, %v71_v40  ;;  %v183_v49 = vld [vmem:[#allocation5 + $0x3c8] sm:$0xff]  ;;  %v185_v50 = vld [vmem:[#allocation5 + $0x3d8] sm:$0xff]  ;;  %v182_v56 = vld [vmem:[#allocation5 + $0x3c0] sm:$0xff] }
  0x4e   :  { %923 = vmatpush1.bf16.msra.mxu0 %v922_v42  ;;  %v952_v42 = vpack.c.bf16 %v181_v32, %v179_v31  ;;  %v77_v54 = vld [vmem:[#allocation5 + $0x78] sm:$0xff]  ;;  %v74_v58 = vld [vmem:[#allocation5 + $0x60] sm:$0xff]  ;;  %v184_v61 = vld [vmem:[#allocation5 + $0x3d0] sm:$0xff] }
  0x4f   :  { %925 = vmatprep.subr.bf16.mxu0 %v924_v44  ;;  %v180_v44 = vld [vmem:[#allocation5 + $0x3b0] sm:$0xff]  ;;  %v79_v62 = vld [vmem:[#allocation5 + $0x88] sm:$0xff]  ;;  %v81_v63 = vld [vmem:[#allocation5 + $0x98] sm:$0xff]  ;;  %v958_v4 = vpack.c.bf16 %v184_v61, %v182_v56 }
  0x50   :  { %843 = vmatpush1.bf16.msra.mxu1 %v842_v39  ;;  %v954_v55 = vpack.c.bf16 %v180_v44, %v178_v38  ;;  %v187_v0 = vld [vmem:[#allocation5 + $0x3e8] sm:$0xff]  ;;  %v188_v5 = vld [vmem:[#allocation5 + $0x3f0] sm:$0xff]  ;;  %v852_v6 = vpack.c.bf16 %v81_v63, %v79_v62  ;;  %v1360_v10 = vld [vmem:[#allocation2 + $0x8] sm:$0xff] }
  0x51   :  { %845 = vmatprep.subr.bf16.mxu1 %v844_v45  ;;  %v83_v11 = vld [vmem:[#allocation5 + $0xa8] sm:$0xff]  ;;  %v85_v12 = vld [vmem:[#allocation5 + $0xb8] sm:$0xff]  ;;  %v1368_v18 = vrot.slane %v1360_v10, %v1349_v43  ;;  %v82_v20 = vld [vmem:[#allocation5 + $0xa0] sm:$0xff] }
  0x52   :  { %927 = vmatpush1.bf16.msra.mxu0 %v926_v51  ;;  %v75_v51 = vld [vmem:[#allocation5 + $0x68] sm:$0xff]  ;;  %v856_v19 = vpack.c.bf16 %v85_v12, %v83_v11  ;;  %v84_v21 = vld [vmem:[#allocation5 + $0xb0] sm:$0xff]  ;;  %v197_v47 = vld [vmem:[#allocation5 + $0x438] sm:$0xff] }
  0x53   :  { %929 = vmatprep.subr.bf16.mxu0 %v928_v53  ;;  %v846_v53 = vpack.c.bf16 %v72_v48, %v70_v46  ;;  %v848_v57 = vpack.c.bf16 %v77_v54, %v75_v51  ;;  %v192_v24 = vld [vmem:[#allocation5 + $0x410] sm:$0xff]  ;;  %v195_v25 = vld [vmem:[#allocation5 + $0x428] sm:$0xff]  ;;  %v89_v28 = vld [vmem:[#allocation5 + $0xd8] sm:$0xff]  ;;  %v858_v29 = vpack.c.bf16 %v84_v21, %v82_v20  ;;  %v364_v32 = vcombine.high %v1368_v18, %v1368_v18 }
  0x54   :  { %v87_v27 = vld [vmem:[#allocation5 + $0xc8] sm:$0xff]  ;;  %v194_v31 = vld [vmem:[#allocation5 + $0x420] sm:$0xff]  ;;  %v88_v34 = vld [vmem:[#allocation5 + $0xd0] sm:$0xff]  ;;  %v968_v36 = vpack.c.bf16 %v197_v47, %v195_v25 }
  0x55   :  { %847 = vmatpush1.bf16.msra.mxu1 %v846_v53  ;;  %v86_v33 = vld [vmem:[#allocation5 + $0xc0] sm:$0xff]  ;;  %v860_v38 = vpack.c.bf16 %v89_v28, %v87_v27  ;;  %v91_v39 = vld [vmem:[#allocation5 + $0xe8] sm:$0xff]  ;;  %v93_v40 = vld [vmem:[#allocation5 + $0xf8] sm:$0xff] }
  0x56   :  { %931 = vmatpush1.bf16.msra.mxu0 %v930_v59  ;;  %v76_v59 = vld [vmem:[#allocation5 + $0x70] sm:$0xff]  ;;  %849 = vmatprep.subr.bf16.mxu1 %v848_v57  ;;  %v199_v41 = vld [vmem:[#allocation5 + $0x448] sm:$0xff]  ;;  %v862_v44 = vpack.c.bf16 %v88_v34, %v86_v33  ;;  %v198_v46 = vld [vmem:[#allocation5 + $0x440] sm:$0xff]  ;;  %v864_v48 = vpack.c.bf16 %v93_v40, %v91_v39 }
  0x57   :  { %933 = vmatprep.subr.bf16.mxu0 %v932_v60  ;;  %v956_v60 = vpack.c.bf16 %v185_v50, %v183_v49  ;;  %v850_v3 = vpack.c.bf16 %v76_v59, %v74_v58  ;;  %v90_v49 = vld [vmem:[#allocation5 + $0xe0] sm:$0xff]  ;;  %v92_v50 = vld [vmem:[#allocation5 + $0xf0] sm:$0xff]  ;;  %v95_v54 = vld [vmem:[#allocation5 + $0x108] sm:$0xff] }
  0x58   :  { %v200_v53 = vld [vmem:[#allocation5 + $0x450] sm:$0xff]  ;;  %v203_v56 = vld [vmem:[#allocation5 + $0x468] sm:$0xff]  ;;  %v205_v57 = vld [vmem:[#allocation5 + $0x478] sm:$0xff]  ;;  %v866_v58 = vpack.c.bf16 %v92_v50, %v90_v49 }
  0x59   :  { %851 = vmatpush1.bf16.msra.mxu1 %v850_v3  ;;  %v202_v59 = vld [vmem:[#allocation5 + $0x460] sm:$0xff]  ;;  %v96_v62 = vld [vmem:[#allocation5 + $0x110] sm:$0xff]  ;;  %v976_v63 = vpack.c.bf16 %v205_v57, %v203_v56  ;;  %v207_v3 = vld [vmem:[#allocation5 + $0x488] sm:$0xff] }
  0x5a   :  { %935 = vmatpush1.bf16.msra.mxu0 %v934_v1  ;;  %v189_v1 = vld [vmem:[#allocation5 + $0x3f8] sm:$0xff]  ;;  %853 = vmatprep.subr.bf16.mxu1 %v852_v6  ;;  %v94_v61 = vld [vmem:[#allocation5 + $0x100] sm:$0xff]  ;;  %v100_v11 = vld [vmem:[#allocation5 + $0x130] sm:$0xff] }
  0x5b   :  { %937 = vmatprep.subr.bf16.mxu0 %v936_v2  ;;  %v186_v2 = vld [vmem:[#allocation5 + $0x3e0] sm:$0xff]  ;;  %v960_v9 = vpack.c.bf16 %v189_v1, %v187_v0  ;;  %v204_v0 = vld [vmem:[#allocation5 + $0x470] sm:$0xff]  ;;  %v99_v1 = vld [vmem:[#allocation5 + $0x128] sm:$0xff] }
  0x5c   :  { %v962_v17 = vpack.c.bf16 %v188_v5, %v186_v2  ;;  %v101_v2 = vld [vmem:[#allocation5 + $0x138] sm:$0xff]  ;;  %v870_v5 = vpack.c.bf16 %v96_v62, %v94_v61  ;;  %v978_v6 = vpack.c.bf16 %v204_v0, %v202_v59  ;;  %v104_v25 = vld [vmem:[#allocation5 + $0x150] sm:$0xff]  ;;  %v107_v27 = vld [vmem:[#allocation5 + $0x168] sm:$0xff] }
  0x5d   :  { %v212_v47 = vld [vmem:[#allocation5 + $0x4b0] sm:$0xff]  ;;  %v109_v28 = vld [vmem:[#allocation5 + $0x178] sm:$0xff]  ;;  %v214_v33 = vld [vmem:[#allocation5 + $0x4c0] sm:$0xff] }
  0x5e   :  { %939 = vmatpush1.bf16.msra.mxu0 %v938_v7  ;;  %v78_v7 = vld [vmem:[#allocation5 + $0x80] sm:$0xff]  ;;  %v880_v34 = vpack.c.bf16 %v109_v28, %v107_v27  ;;  %v216_v39 = vld [vmem:[#allocation5 + $0x4d0] sm:$0xff]  ;;  %v111_v40 = vld [vmem:[#allocation5 + $0x188] sm:$0xff] }
  0x5f   :  { %941 = vmatprep.subr.bf16.mxu0 %v940_v8  ;;  %v80_v8 = vld [vmem:[#allocation5 + $0x90] sm:$0xff]  ;;  %v110_v50 = vld [vmem:[#allocation5 + $0x180] sm:$0xff]  ;;  %v117_v56 = vld [vmem:[#allocation5 + $0x1b8] sm:$0xff] }
  0x60   :  { %v854_v15 = vpack.c.bf16 %v80_v8, %v78_v7  ;;  %v206_v7 = vld [vmem:[#allocation5 + $0x480] sm:$0xff]  ;;  %v872_v8 = vpack.c.bf16 %v101_v2, %v99_v1  ;;  %v223_v57 = vld [vmem:[#allocation5 + $0x508] sm:$0xff]  ;;  %v224_v1 = vld [vmem:[#allocation5 + $0x510] sm:$0xff] }
  0x61   :  { %v114_v62 = vld [vmem:[#allocation5 + $0x1a0] sm:$0xff]  ;;  %v119_v2 = vld [vmem:[#allocation5 + $0x1c8] sm:$0xff]  ;;  %v232_v27 = vld [vmem:[#allocation5 + $0x550] sm:$0xff] }
  0x62   :  { %943 = vmatpush1.bf16.msra.mxu0 %v942_v13  ;;  %v191_v13 = vld [vmem:[#allocation5 + $0x408] sm:$0xff]  ;;  %855 = vmatpush1.bf16.msra.mxu1 %v854_v15  ;;  %v105_v15 = vld [vmem:[#allocation5 + $0x158] sm:$0xff] }
  0x63   :  { %945 = vmatprep.subr.bf16.mxu0 %v944_v14  ;;  %v193_v14 = vld [vmem:[#allocation5 + $0x418] sm:$0xff]  ;;  %857 = vmatprep.subr.bf16.mxu1 %v856_v19  ;;  %v661_v28 = vld [vmem:[#allocation7 + $0x8] sm:$0xff] }
  0x64   :  { %v964_v22 = vpack.c.bf16 %v193_v14, %v191_v13  ;;  %v208_v13 = vld [vmem:[#allocation5 + $0x490] sm:$0xff]  ;;  %v103_v14 = vld [vmem:[#allocation5 + $0x148] sm:$0xff]  ;;  %v213_v19 = vld [vmem:[#allocation5 + $0x4b8] sm:$0xff] }
  0x65   :  { %v982_v21 = vpack.c.bf16 %v208_v13, %v206_v7 }
  0x66   :  { %947 = vmatpush1.bf16.msra.mxu0 %v946_v23  ;;  %v190_v23 = vld [vmem:[#allocation5 + $0x400] sm:$0xff]  ;;  %859 = vmatpush1.bf16.msra.mxu1 %v858_v29  ;;  %v215_v29 = vld [vmem:[#allocation5 + $0x4c8] sm:$0xff] }
  0x67   :  { %949 = vmatprep.subr.bf16.mxu0 %v948_v26  ;;  %v347_v26 = vcombine.high %v1364_v16, %v1364_v16  ;;  %v966_v30 = vpack.c.bf16 %v192_v24, %v190_v23  ;;  %861 = vmatprep.subr.bf16.mxu1 %v860_v38  ;;  %v876_v23 = vpack.c.bf16 %v105_v15, %v103_v14  ;;  %v102_v24 = vld [vmem:[#allocation5 + $0x140] sm:$0xff]  ;;  %v228_v14 = vld [vmem:[#allocation5 + $0x530] sm:$0xff]  ;;  %v123_v15 = vld [vmem:[#allocation5 + $0x1e8] sm:$0xff] }
  0x69   :  { %438 = vmatprep.mubr.f32.mxu1 %v347_v26 }
  0x6a   :  { %951 = vmatpush1.bf16.msra.mxu0 %v950_v37  ;;  %v196_v37 = vld [vmem:[#allocation5 + $0x430] sm:$0xff]  ;;  %863 = vmatpush1.bf16.msra.mxu1 %v862_v44  ;;  %v221_v44 = vld [vmem:[#allocation5 + $0x4f8] sm:$0xff] }
  0x6b   :  { %953 = vmatprep.subr.bf16.mxu0 %v952_v42  ;;  %v201_v42 = vld [vmem:[#allocation5 + $0x458] sm:$0xff]  ;;  %v970_v45 = vpack.c.bf16 %v196_v37, %v194_v31  ;;  %865 = vmatprep.subr.bf16.mxu1 %v864_v48  ;;  %v878_v31 = vpack.c.bf16 %v104_v25, %v102_v24  ;;  %v108_v37 = vld [vmem:[#allocation5 + $0x170] sm:$0xff]  ;;  %v218_v48 = vld [vmem:[#allocation5 + $0x4e0] sm:$0xff] }
  0x6c   :  { %v972_v51 = vpack.c.bf16 %v201_v42, %v199_v41  ;;  %v113_v41 = vld [vmem:[#allocation5 + $0x198] sm:$0xff]  ;;  %v219_v42 = vld [vmem:[#allocation5 + $0x4e8] sm:$0xff]  ;;  %v122_v25 = vld [vmem:[#allocation5 + $0x1e0] sm:$0xff] }
  0x6d   :  { %v884_v49 = vpack.c.bf16 %v113_v41, %v111_v40  ;;  %v236_v40 = vld [vmem:[#allocation5 + $0x570] sm:$0xff]  ;;  %v665_v41 = vld [vmem:[#allocation7 + $0x28] sm:$0xff] }
  0x6e   :  { %955 = vmatpush1.bf16.msra.mxu0 %v954_v55  ;;  %v97_v55 = vld [vmem:[#allocation5 + $0x118] sm:$0xff]  ;;  %867 = vmatpush1.bf16.msra.mxu1 %v866_v58 }
  0x6f   :  { %957 = vmatprep.subr.bf16.mxu0 %v956_v60  ;;  %v868_v60 = vpack.c.bf16 %v97_v55, %v95_v54  ;;  %v220_v54 = vld [vmem:[#allocation5 + $0x4f0] sm:$0xff]  ;;  %v115_v55 = vld [vmem:[#allocation5 + $0x1a8] sm:$0xff]  ;;  %v225_v58 = vld [vmem:[#allocation5 + $0x518] sm:$0xff] }
  0x70   :  { %v994_v59 = vpack.c.bf16 %v220_v54, %v218_v48  ;;  %v888_v61 = vpack.c.bf16 %v117_v56, %v115_v55  ;;  %v996_v0 = vpack.c.bf16 %v225_v58, %v223_v57  ;;  %v240_v55 = vld [vmem:[#allocation5 + $0x590] sm:$0xff]  ;;  %v669_v56 = vld [vmem:[#allocation7 + $0x48] sm:$0xff]  ;;  %v671_v57 = vld [vmem:[#allocation7 + $0x58] sm:$0xff] }
  0x71   :  { %869 = vmatprep.subr.bf16.mxu1 %v868_v60  ;;  %v222_v60 = vld [vmem:[#allocation5 + $0x500] sm:$0xff]  ;;  %v243_v58 = vld [vmem:[#allocation5 + $0x5a8] sm:$0xff] }
  0x72   :  { %959 = vmatpush1.bf16.msra.mxu0 %v958_v4  ;;  %v209_v4 = vld [vmem:[#allocation5 + $0x498] sm:$0xff]  ;;  %871 = vmatpush1.bf16.msra.mxu1 %v870_v5  ;;  %v998_v7 = vpack.c.bf16 %v224_v1, %v222_v60 }
  0x73   :  { %961 = vmatprep.subr.bf16.mxu0 %v960_v9  ;;  %v98_v9 = vld [vmem:[#allocation5 + $0x120] sm:$0xff]  ;;  %v980_v12 = vpack.c.bf16 %v209_v4, %v207_v3  ;;  %873 = vmatprep.subr.bf16.mxu1 %v872_v8  ;;  %v121_v3 = vld [vmem:[#allocation5 + $0x1d8] sm:$0xff]  ;;  %v227_v4 = vld [vmem:[#allocation5 + $0x528] sm:$0xff] }
  0x74   :  { %v874_v20 = vpack.c.bf16 %v100_v11, %v98_v9  ;;  %v229_v5 = vld [vmem:[#allocation5 + $0x538] sm:$0xff]  ;;  %v226_v8 = vld [vmem:[#allocation5 + $0x520] sm:$0xff]  ;;  %v892_v9 = vpack.c.bf16 %v121_v3, %v119_v2  ;;  %v244_v2 = vld [vmem:[#allocation5 + $0x5b0] sm:$0xff] }
  0x75   :  { %v118_v11 = vld [vmem:[#allocation5 + $0x1c0] sm:$0xff]  ;;  %v1000_v13 = vpack.c.bf16 %v229_v5, %v227_v4  ;;  %v673_v3 = vld [vmem:[#allocation7 + $0x68] sm:$0xff]  ;;  %v675_v4 = vld [vmem:[#allocation7 + $0x78] sm:$0xff] }
  0x76   :  { %963 = vmatpush1.bf16.msra.mxu0 %v962_v17  ;;  %v211_v17 = vld [vmem:[#allocation5 + $0x4a8] sm:$0xff]  ;;  %875 = vmatpush1.bf16.msra.mxu1 %v874_v20  ;;  %v233_v20 = vld [vmem:[#allocation5 + $0x558] sm:$0xff] }
  0x77   :  { %965 = vmatprep.subr.bf16.mxu0 %v964_v22  ;;  %v210_v22 = vld [vmem:[#allocation5 + $0x4a0] sm:$0xff]  ;;  %v984_v26 = vpack.c.bf16 %v213_v19, %v211_v17  ;;  %877 = vmatprep.subr.bf16.mxu1 %v876_v23  ;;  %v125_v17 = vld [vmem:[#allocation5 + $0x1f8] sm:$0xff]  ;;  %v231_v19 = vld [vmem:[#allocation5 + $0x548] sm:$0xff] }
  0x78   :  { %v230_v23 = vld [vmem:[#allocation5 + $0x540] sm:$0xff]  ;;  %v896_v24 = vpack.c.bf16 %v125_v17, %v123_v15  ;;  %v247_v5 = vld [vmem:[#allocation5 + $0x5c8] sm:$0xff]  ;;  %v679_v17 = vld [vmem:[#allocation7 + $0x98] sm:$0xff] }
  0x79   :  { %510 = vmatmul.mubr.f32.vlgmr.msra.gmra.mrb[0].mxu0 %v1356_v52  ;;  %v974_v52 = vpack.c.bf16 %v200_v53, %v198_v46  ;;  %v990_v46 = vpack.c.bf16 %v216_v39, %v214_v33  ;;  %v992_v53 = vpack.c.bf16 %v221_v44, %v219_v42  ;;  %v1006_v33 = vpack.c.bf16 %v232_v27, %v230_v23  ;;  %v667_v42 = vld [vmem:[#allocation7 + $0x38] sm:$0xff]  ;;  %v239_v44 = vld [vmem:[#allocation5 + $0x588] sm:$0xff]  ;;  %v250_v23 = vld [vmem:[#allocation5 + $0x5e0] sm:$0xff] }
  0x7a   :  { %967 = vmatpush1.bf16.msra.mxu0 %v966_v30  ;;  %580 = vmatprep.mubr.f32.mxu0 %v364_v32  ;;  %v217_v30 = vld [vmem:[#allocation5 + $0x4d8] sm:$0xff]  ;;  %v986_v32 = vpack.c.bf16 %v212_v47, %v210_v22  ;;  %v1002_v22 = vpack.c.bf16 %v228_v14, %v226_v8  ;;  %v1004_v47 = vpack.c.bf16 %v233_v20, %v231_v19  ;;  %v246_v8 = vld [vmem:[#allocation5 + $0x5c0] sm:$0xff]  ;;  %v248_v14 = vld [vmem:[#allocation5 + $0x5d0] sm:$0xff] }
  0x7b   :  { %969 = vmatprep.subr.bf16.mxu0 %v968_v36  ;;  %v106_v36 = vld [vmem:[#allocation5 + $0x160] sm:$0xff]  ;;  %v988_v38 = vpack.c.bf16 %v217_v30, %v215_v29  ;;  %879 = vmatpush1.bf16.msra.mxu1 %v878_v31  ;;  %v663_v29 = vld [vmem:[#allocation7 + $0x18] sm:$0xff]  ;;  %v235_v30 = vld [vmem:[#allocation5 + $0x568] sm:$0xff] }
  0x7c   :  { %881 = vmatprep.subr.bf16.mxu1 %v880_v34  ;;  %v237_v31 = vld [vmem:[#allocation5 + $0x578] sm:$0xff]  ;;  %v234_v34 = vld [vmem:[#allocation5 + $0x560] sm:$0xff]  ;;  %v677_v15 = vld [vmem:[#allocation7 + $0x88] sm:$0xff] }
  0x7d   :  { %v1008_v39 = vpack.c.bf16 %v237_v31, %v235_v30  ;;  %v1010_v48 = vpack.c.bf16 %v236_v40, %v234_v34  ;;  %v251_v19 = vld [vmem:[#allocation5 + $0x5e8] sm:$0xff]  ;;  %v253_v20 = vld [vmem:[#allocation5 + $0x5f8] sm:$0xff]  ;;  %v254_v40 = vld [vmem:[#allocation5 + $0x600] sm:$0xff] }
  0x7e   :  { %971 = vmatpush1.bf16.msra.mxu0 %v970_v45  ;;  %v882_v45 = vpack.c.bf16 %v108_v37, %v106_v36  ;;  %v1092_v36 = vpack.c.bf16 %v663_v29, %v661_v28  ;;  %v660_v37 = vld [vmem:[#allocation7] sm:$0xff]  ;;  %v1024_v27 = vpack.c.bf16 %v253_v20, %v251_v19  ;;  %v252_v28 = vld [vmem:[#allocation5 + $0x5f0] sm:$0xff]  ;;  %v681_v29 = vld [vmem:[#allocation7 + $0xa8] sm:$0xff] }
  0x7f   :  { %973 = vmatprep.subr.bf16.mxu0 %v972_v51  ;;  %v112_v51 = vld [vmem:[#allocation5 + $0x190] sm:$0xff]  ;;  %v683_v30 = vld [vmem:[#allocation7 + $0xb8] sm:$0xff]  ;;  %v255_v31 = vld [vmem:[#allocation5 + $0x608] sm:$0xff]  ;;  %v1026_v34 = vpack.c.bf16 %v252_v28, %v250_v23 }
  0x80   :  { %883 = vmatpush1.bf16.msra.mxu1 %v882_v45  ;;  %v241_v45 = vld [vmem:[#allocation5 + $0x598] sm:$0xff]  ;;  %v271_v19 = vld [vmem:[#allocation5 + $0x688] sm:$0xff]  ;;  %v270_v23 = vld [vmem:[#allocation5 + $0x680] sm:$0xff] }
  0x81   :  { %885 = vmatprep.subr.bf16.mxu1 %v884_v49  ;;  %v238_v49 = vld [vmem:[#allocation5 + $0x580] sm:$0xff]  ;;  %v1012_v54 = vpack.c.bf16 %v241_v45, %v239_v44  ;;  %v261_v44 = vld [vmem:[#allocation5 + $0x638] sm:$0xff]  ;;  %v685_v45 = vld [vmem:[#allocation7 + $0xc8] sm:$0xff] }
  0x82   :  { %975 = vmatpush1.bf16.msra.mxu0 %v974_v52  ;;  %v886_v52 = vpack.c.bf16 %v112_v51, %v110_v50  ;;  %v1096_v50 = vpack.c.bf16 %v667_v42, %v665_v41  ;;  %v664_v51 = vld [vmem:[#allocation7 + $0x20] sm:$0xff]  ;;  %v1014_v60 = vpack.c.bf16 %v240_v55, %v238_v49  ;;  %v256_v41 = vld [vmem:[#allocation5 + $0x610] sm:$0xff]  ;;  %v259_v42 = vld [vmem:[#allocation5 + $0x628] sm:$0xff] }
  0x83   :  { %977 = vmatprep.subr.bf16.mxu0 %v976_v63  ;;  %v116_v63 = vld [vmem:[#allocation5 + $0x1b0] sm:$0xff]  ;;  %v1030_v49 = vpack.c.bf16 %v256_v41, %v254_v40  ;;  %v273_v20 = vld [vmem:[#allocation5 + $0x698] sm:$0xff]  ;;  %v701_v28 = vld [vmem:[#allocation7 + $0x148] sm:$0xff] }
  0x84   :  { %887 = vmatpush1.bf16.msra.mxu1 %v886_v52  ;;  %v245_v52 = vld [vmem:[#allocation5 + $0x5b8] sm:$0xff]  ;;  %v260_v55 = vld [vmem:[#allocation5 + $0x630] sm:$0xff]  ;;  %v705_v41 = vld [vmem:[#allocation7 + $0x168] sm:$0xff] }
  0x85   :  { %889 = vmatprep.subr.bf16.mxu1 %v888_v61  ;;  %v242_v61 = vld [vmem:[#allocation5 + $0x5a0] sm:$0xff]  ;;  %v1016_v1 = vpack.c.bf16 %v245_v52, %v243_v58  ;;  %v691_v58 = vld [vmem:[#allocation7 + $0xf8] sm:$0xff]  ;;  %v263_v52 = vld [vmem:[#allocation5 + $0x648] sm:$0xff] }
  0x86   :  { %979 = vmatpush1.bf16.msra.mxu0 %v978_v6  ;;  %v890_v6 = vpack.c.bf16 %v116_v63, %v114_v62  ;;  %v1100_v62 = vpack.c.bf16 %v671_v57, %v669_v56  ;;  %v668_v63 = vld [vmem:[#allocation7 + $0x40] sm:$0xff]  ;;  %v689_v57 = vld [vmem:[#allocation7 + $0xe8] sm:$0xff]  ;;  %v276_v40 = vld [vmem:[#allocation5 + $0x6b0] sm:$0xff] }
  0x87   :  { %981 = vmatprep.subr.bf16.mxu0 %v980_v12  ;;  %v120_v12 = vld [vmem:[#allocation5 + $0x1d0] sm:$0xff] }
  0x88   :  { %891 = vmatpush1.bf16.msra.mxu1 %v890_v6  ;;  %v249_v6 = vld [vmem:[#allocation5 + $0x5d8] sm:$0xff] }
  0x89   :  { %893 = vmatprep.subr.bf16.mxu1 %v892_v9  ;;  %v1104_v9 = vpack.c.bf16 %v675_v4, %v673_v3  ;;  %v264_v3 = vld [vmem:[#allocation5 + $0x650] sm:$0xff]  ;;  %v693_v4 = vld [vmem:[#allocation7 + $0x108] sm:$0xff] }
  0x8a   :  { %983 = vmatpush1.bf16.msra.mxu0 %v982_v21  ;;  %v894_v21 = vpack.c.bf16 %v120_v12, %v118_v11  ;;  %v672_v11 = vld [vmem:[#allocation7 + $0x60] sm:$0xff]  ;;  %v674_v12 = vld [vmem:[#allocation7 + $0x70] sm:$0xff] }
  0x8b   :  { %985 = vmatprep.subr.bf16.mxu0 %v984_v26  ;;  %v124_v26 = vld [vmem:[#allocation5 + $0x1f0] sm:$0xff] }
  0x8c   :  { %895 = vmatpush1.bf16.msra.mxu1 %v894_v21  ;;  %v1106_v21 = vpack.c.bf16 %v674_v12, %v672_v11  ;;  %v692_v11 = vld [vmem:[#allocation7 + $0x100] sm:$0xff]  ;;  %v694_v12 = vld [vmem:[#allocation7 + $0x110] sm:$0xff] }
  0x8d   :  { %897 = vmatprep.subr.bf16.mxu1 %v896_v24  ;;  %v349_v24 = vcombine.high %v1360_v10, %v1360_v10  ;;  %v1112_v10 = vpack.c.bf16 %v683_v30, %v681_v29  ;;  %v703_v29 = vld [vmem:[#allocation7 + $0x158] sm:$0xff]  ;;  %v275_v30 = vld [vmem:[#allocation5 + $0x6a8] sm:$0xff] }
  0x8e   :  { %987 = vmatpush1.bf16.msra.mxu0 %v986_v32  ;;  %v898_v32 = vpack.c.bf16 %v124_v26, %v122_v25  ;;  %v1108_v25 = vpack.c.bf16 %v679_v17, %v677_v15  ;;  %v676_v26 = vld [vmem:[#allocation7 + $0x80] sm:$0xff]  ;;  %v697_v15 = vld [vmem:[#allocation7 + $0x128] sm:$0xff]  ;;  %v699_v17 = vld [vmem:[#allocation7 + $0x138] sm:$0xff] }
  0x8f   :  { %989 = vmatprep.subr.bf16.mxu0 %v988_v38  ;;  %v662_v38 = vld [vmem:[#allocation7 + $0x10] sm:$0xff] }
  0x90   :  { %899 = vmatpush1.bf16.msra.mxu1 %v898_v32  ;;  %v257_v32 = vld [vmem:[#allocation5 + $0x618] sm:$0xff] }
  0x91   :  { %1093 = vmatprep.subr.bf16.mxu1 %v1092_v36  ;;  %v1379_v36 = vrot.slane %v349_v24, %v1349_v43  ;;  %v1128_v24 = vpack.c.bf16 %v699_v17, %v697_v15 }
  0x92   :  { %991 = vmatpush1.bf16.msra.mxu0 %v990_v46  ;;  %v1094_v46 = vpack.c.bf16 %v662_v38, %v660_v37  ;;  %v680_v37 = vld [vmem:[#allocation7 + $0xa0] sm:$0xff]  ;;  %v682_v38 = vld [vmem:[#allocation7 + $0xb0] sm:$0xff] }
  0x93   :  { %993 = vmatprep.subr.bf16.mxu0 %v992_v53  ;;  %v666_v53 = vld [vmem:[#allocation7 + $0x30] sm:$0xff]  ;;  %439 = vmatmul.mubr.f32.vlgmr.msra.gmra.mrb[0].mxu1 %v1364_v16  ;;  %v1018_v16 = vpack.c.bf16 %v244_v2, %v242_v61  ;;  %v365_v43 = vcombine.high %v1379_v36, %v1379_v36 }
  0x94   :  { %1095 = vmatpush1.bf16.msra.mxu1 %v1094_v46  ;;  %v687_v46 = vld [vmem:[#allocation7 + $0xd8] sm:$0xff] }
  0x95   :  { %1097 = vmatprep.subr.bf16.mxu1 %v1096_v50  ;;  %v258_v50 = vld [vmem:[#allocation5 + $0x620] sm:$0xff]  ;;  %v1116_v56 = vpack.c.bf16 %v687_v46, %v685_v45  ;;  %v281_v45 = vld [vmem:[#allocation5 + $0x6d8] sm:$0xff] }
  0x96   :  { %995 = vmatpush1.bf16.msra.mxu0 %v994_v59  ;;  %v1098_v59 = vpack.c.bf16 %v666_v53, %v664_v51  ;;  %v684_v51 = vld [vmem:[#allocation7 + $0xc0] sm:$0xff]  ;;  %v686_v53 = vld [vmem:[#allocation7 + $0xd0] sm:$0xff]  ;;  %v1034_v61 = vpack.c.bf16 %v260_v55, %v258_v50  ;;  %v709_v55 = vld [vmem:[#allocation7 + $0x188] sm:$0xff] }
  0x97   :  { %997 = vmatprep.subr.bf16.mxu0 %v996_v0  ;;  %v670_v0 = vld [vmem:[#allocation7 + $0x50] sm:$0xff] }
  0x98   :  { %1099 = vmatpush1.bf16.msra.mxu1 %v1098_v59  ;;  %v265_v59 = vld [vmem:[#allocation5 + $0x658] sm:$0xff] }
  0x99   :  { %1101 = vmatprep.subr.bf16.mxu1 %v1100_v62  ;;  %v262_v62 = vld [vmem:[#allocation5 + $0x640] sm:$0xff]  ;;  %v1036_v2 = vpack.c.bf16 %v265_v59, %v263_v52 }
  0x9a   :  { %999 = vmatpush1.bf16.msra.mxu0 %v998_v7  ;;  %v1102_v7 = vpack.c.bf16 %v670_v0, %v668_v63  ;;  %v1120_v63 = vpack.c.bf16 %v691_v58, %v689_v57  ;;  %v688_v0 = vld [vmem:[#allocation7 + $0xe0] sm:$0xff]  ;;  %v283_v57 = vld [vmem:[#allocation5 + $0x6e8] sm:$0xff]  ;;  %v285_v58 = vld [vmem:[#allocation5 + $0x6f8] sm:$0xff] }
  0x9b   :  { %1001 = vmatprep.subr.bf16.mxu0 %v1000_v13  ;;  %v1020_v13 = vpack.c.bf16 %v249_v6, %v247_v5  ;;  %v695_v5 = vld [vmem:[#allocation7 + $0x118] sm:$0xff]  ;;  %v267_v6 = vld [vmem:[#allocation5 + $0x668] sm:$0xff] }
  0x9c   :  { %1103 = vmatpush1.bf16.msra.mxu1 %v1102_v7  ;;  %v269_v7 = vld [vmem:[#allocation5 + $0x678] sm:$0xff] }
  0x9d   :  { %1105 = vmatprep.subr.bf16.mxu1 %v1104_v9  ;;  %v1124_v9 = vpack.c.bf16 %v695_v5, %v693_v4  ;;  %v287_v4 = vld [vmem:[#allocation5 + $0x708] sm:$0xff]  ;;  %v289_v5 = vld [vmem:[#allocation5 + $0x718] sm:$0xff] }
  0x9e   :  { %1003 = vmatpush1.bf16.msra.mxu0 %v1002_v22  ;;  %v1022_v22 = vpack.c.bf16 %v248_v14, %v246_v8  ;;  %v266_v8 = vld [vmem:[#allocation5 + $0x660] sm:$0xff]  ;;  %v268_v14 = vld [vmem:[#allocation5 + $0x670] sm:$0xff] }
  0x9f   :  { %1005 = vmatprep.subr.bf16.mxu0 %v1004_v47  ;;  %v678_v47 = vld [vmem:[#allocation7 + $0x90] sm:$0xff] }
  0xa0   :  { %1107 = vmatpush1.bf16.msra.mxu1 %v1106_v21  ;;  %v1126_v21 = vpack.c.bf16 %v694_v12, %v692_v11  ;;  %v286_v11 = vld [vmem:[#allocation5 + $0x700] sm:$0xff]  ;;  %v288_v12 = vld [vmem:[#allocation5 + $0x710] sm:$0xff] }
  0xa1   :  { %1109 = vmatprep.subr.bf16.mxu1 %v1108_v25  ;;  %v696_v25 = vld [vmem:[#allocation7 + $0x120] sm:$0xff]  ;;  %v1062_v17 = vpack.c.bf16 %v288_v12, %v286_v11 }
  0xa2   :  { %1007 = vmatpush1.bf16.msra.mxu0 %v1006_v33  ;;  %v1110_v33 = vpack.c.bf16 %v678_v47, %v676_v26  ;;  %v698_v26 = vld [vmem:[#allocation7 + $0x130] sm:$0xff]  ;;  %v1044_v47 = vpack.c.bf16 %v273_v20, %v271_v19  ;;  %v290_v20 = vld [vmem:[#allocation5 + $0x720] sm:$0xff] }
  0xa3   :  { %1009 = vmatprep.subr.bf16.mxu0 %v1008_v39  ;;  %v1028_v39 = vpack.c.bf16 %v257_v32, %v255_v31  ;;  %v277_v31 = vld [vmem:[#allocation5 + $0x6b8] sm:$0xff]  ;;  %v1130_v32 = vpack.c.bf16 %v698_v26, %v696_v25  ;;  %v294_v26 = vld [vmem:[#allocation5 + $0x740] sm:$0xff] }
  0xa4   :  { %1111 = vmatpush1.bf16.msra.mxu1 %v1110_v33 }
  0xa5   :  { %1113 = vmatprep.subr.bf16.mxu1 %v1112_v10  ;;  %v1132_v10 = vpack.c.bf16 %v703_v29, %v701_v28  ;;  %v301_v28 = vld [vmem:[#allocation5 + $0x778] sm:$0xff] }
  0xa6   :  { %1011 = vmatpush1.bf16.msra.mxu0 %v1010_v48  ;;  %v1114_v48 = vpack.c.bf16 %v682_v38, %v680_v37  ;;  %v700_v37 = vld [vmem:[#allocation7 + $0x140] sm:$0xff]  ;;  %v702_v38 = vld [vmem:[#allocation7 + $0x150] sm:$0xff] }
  0xa7   :  { %1013 = vmatprep.subr.bf16.mxu0 %v1012_v54  ;;  %v1032_v54 = vpack.c.bf16 %v261_v44, %v259_v42  ;;  %v707_v42 = vld [vmem:[#allocation7 + $0x178] sm:$0xff]  ;;  %v279_v44 = vld [vmem:[#allocation5 + $0x6c8] sm:$0xff]  ;;  %v1134_v46 = vpack.c.bf16 %v702_v38, %v700_v37  ;;  %v302_v38 = vld [vmem:[#allocation5 + $0x780] sm:$0xff] }
  0xa8   :  { %1115 = vmatpush1.bf16.msra.mxu1 %v1114_v48  ;;  %v1136_v50 = vpack.c.bf16 %v707_v42, %v705_v41  ;;  %v309_v41 = vld [vmem:[#allocation5 + $0x7b8] sm:$0xff] }
  0xa9   :  { %1117 = vmatprep.subr.bf16.mxu1 %v1116_v56  ;;  %v711_v56 = vld [vmem:[#allocation7 + $0x198] sm:$0xff] }
  0xaa   :  { %1015 = vmatpush1.bf16.msra.mxu0 %v1014_v60  ;;  %v1118_v60 = vpack.c.bf16 %v686_v53, %v684_v51  ;;  %v706_v51 = vld [vmem:[#allocation7 + $0x170] sm:$0xff]  ;;  %v1052_v53 = vpack.c.bf16 %v281_v45, %v279_v44  ;;  %v306_v45 = vld [vmem:[#allocation5 + $0x7a0] sm:$0xff] }
  0xab   :  { %1017 = vmatprep.subr.bf16.mxu0 %v1016_v1  ;;  %v690_v1 = vld [vmem:[#allocation7 + $0xf0] sm:$0xff] }
  0xac   :  { %1119 = vmatpush1.bf16.msra.mxu1 %v1118_v60  ;;  %v282_v60 = vld [vmem:[#allocation5 + $0x6e0] sm:$0xff] }
  0xad   :  { %1121 = vmatprep.subr.bf16.mxu1 %v1120_v63  ;;  %v710_v63 = vld [vmem:[#allocation7 + $0x190] sm:$0xff] }
  0xae   :  { %1019 = vmatpush1.bf16.msra.mxu0 %v1018_v16  ;;  %v1122_v16 = vpack.c.bf16 %v690_v1, %v688_v0  ;;  %v1056_v0 = vpack.c.bf16 %v285_v58, %v283_v57  ;;  %v284_v1 = vld [vmem:[#allocation5 + $0x6f0] sm:$0xff]  ;;  %v314_v58 = vld [vmem:[#allocation5 + $0x7e0] sm:$0xff] }
  0xaf   :  { %1021 = vmatprep.subr.bf16.mxu0 %v1020_v13  ;;  %v1040_v13 = vpack.c.bf16 %v269_v7, %v267_v6  ;;  %v1058_v7 = vpack.c.bf16 %v284_v1, %v282_v60  ;;  %v717_v60 = vld [vmem:[#allocation7 + $0x1c8] sm:$0xff] }
  0xb0   :  { %1123 = vmatpush1.bf16.msra.mxu1 %v1122_v16 }
  0xb1   :  { %1125 = vmatprep.subr.bf16.mxu1 %v1124_v9  ;;  %v1060_v9 = vpack.c.bf16 %v289_v5, %v287_v4  ;;  %v720_v5 = vld [vmem:[#allocation7 + $0x1e0] sm:$0xff] }
  0xb2   :  { %1023 = vmatpush1.bf16.msra.mxu0 %v1022_v22  ;;  %v1042_v22 = vpack.c.bf16 %v268_v14, %v266_v8  ;;  %v714_v8 = vld [vmem:[#allocation7 + $0x1b0] sm:$0xff]  ;;  %v293_v14 = vld [vmem:[#allocation5 + $0x738] sm:$0xff] }
  0xb3   :  { %1025 = vmatprep.subr.bf16.mxu0 %v1024_v27  ;;  %v272_v27 = vld [vmem:[#allocation5 + $0x690] sm:$0xff] }
  0xb4   :  { %1127 = vmatpush1.bf16.msra.mxu1 %v1126_v21  ;;  %v1046_v33 = vpack.c.bf16 %v272_v27, %v270_v23  ;;  %v292_v21 = vld [vmem:[#allocation5 + $0x730] sm:$0xff]  ;;  %v297_v23 = vld [vmem:[#allocation5 + $0x758] sm:$0xff]  ;;  %v299_v27 = vld [vmem:[#allocation5 + $0x768] sm:$0xff] }
  0xb5   :  { %1129 = vmatprep.subr.bf16.mxu1 %v1128_v24  ;;  %v1066_v24 = vpack.c.bf16 %v292_v21, %v290_v20 }
  0xb6   :  { %1027 = vmatpush1.bf16.msra.mxu0 %v1026_v34  ;;  %v274_v34 = vld [vmem:[#allocation5 + $0x6a0] sm:$0xff] }
  0xb7   :  { %1029 = vmatprep.subr.bf16.mxu0 %v1028_v39  ;;  %v1048_v39 = vpack.c.bf16 %v277_v31, %v275_v30  ;;  %v1050_v48 = vpack.c.bf16 %v276_v40, %v274_v34  ;;  %v1072_v30 = vpack.c.bf16 %v301_v28, %v299_v27  ;;  %v298_v31 = vld [vmem:[#allocation5 + $0x760] sm:$0xff]  ;;  %v305_v34 = vld [vmem:[#allocation5 + $0x798] sm:$0xff]  ;;  %v307_v40 = vld [vmem:[#allocation5 + $0x7a8] sm:$0xff] }
  0xb8   :  { %1131 = vmatpush1.bf16.msra.mxu1 %v1130_v32  ;;  %v300_v32 = vld [vmem:[#allocation5 + $0x770] sm:$0xff]  ;;  %v1080_v44 = vpack.c.bf16 %v309_v41, %v307_v40 }
  0xb9   :  { %581 = vmatmul.mubr.f32.vlgmr.msra.gmra.mrb[0].mxu0 %v1368_v18  ;;  %v1038_v18 = vpack.c.bf16 %v264_v3, %v262_v62  ;;  %1133 = vmatprep.subr.bf16.mxu1 %v1132_v10  ;;  %v708_v62 = vld [vmem:[#allocation7 + $0x180] sm:$0xff]  ;;  %v715_v3 = vld [vmem:[#allocation7 + $0x1b8] sm:$0xff]  ;;  %v1074_v10 = vpack.c.bf16 %v300_v32, %v298_v31 }
  0xba   :  { %1031 = vmatpush1.bf16.msra.mxu0 %v1030_v49  ;;  %651 = vmatprep.mubr.f32.mxu0 %v365_v43  ;;  %v278_v49 = vld [vmem:[#allocation5 + $0x6c0] sm:$0xff]  ;;  %v1142_v6 = vpack.c.bf16 %v710_v63, %v708_v62 }
  0xbb   :  { %1033 = vmatprep.subr.bf16.mxu0 %v1032_v54  ;;  %v704_v43 = vld [vmem:[#allocation7 + $0x160] sm:$0xff]  ;;  %v280_v54 = vld [vmem:[#allocation5 + $0x6d0] sm:$0xff] }
  0xbc   :  { %1135 = vmatpush1.bf16.msra.mxu1 %v1134_v46  ;;  %v1138_v52 = vpack.c.bf16 %v706_v51, %v704_v43  ;;  %v1054_v59 = vpack.c.bf16 %v280_v54, %v278_v49  ;;  %v308_v46 = vld [vmem:[#allocation5 + $0x7b0] sm:$0xff]  ;;  %v313_v49 = vld [vmem:[#allocation5 + $0x7d8] sm:$0xff]  ;;  %v310_v51 = vld [vmem:[#allocation5 + $0x7c0] sm:$0xff] }
  0xbd   :  { %1137 = vmatprep.subr.bf16.mxu1 %v1136_v50  ;;  %v1082_v50 = vpack.c.bf16 %v308_v46, %v306_v45  ;;  %v315_v54 = vld [vmem:[#allocation5 + $0x7e8] sm:$0xff]  ;;  %v716_v63 = vld [vmem:[#allocation7 + $0x1c0] sm:$0xff] }
  0xbe   :  { %1035 = vmatpush1.bf16.msra.mxu0 %v1034_v61  ;;  %v1140_v61 = vpack.c.bf16 %v711_v56, %v709_v55  ;;  %v317_v55 = vld [vmem:[#allocation5 + $0x7f8] sm:$0xff] }
  0xbf   :  { %1037 = vmatprep.subr.bf16.mxu0 %v1036_v2  ;;  %v713_v2 = vld [vmem:[#allocation7 + $0x1a8] sm:$0xff]  ;;  %v1088_v57 = vpack.c.bf16 %v317_v55, %v315_v54 }
  0xc0   :  { %1139 = vmatpush1.bf16.msra.mxu1 %v1138_v52  ;;  %v1144_v16 = vpack.c.bf16 %v715_v3, %v713_v2  ;;  %v316_v52 = vld [vmem:[#allocation5 + $0x7f0] sm:$0xff]  ;;  %v721_v2 = vld [vmem:[#allocation7 + $0x1e8] sm:$0xff]  ;;  %v723_v3 = vld [vmem:[#allocation7 + $0x1f8] sm:$0xff] }
  0xc1   :  { %1141 = vmatprep.subr.bf16.mxu1 %v1140_v61  ;;  %v719_v61 = vld [vmem:[#allocation7 + $0x1d8] sm:$0xff]  ;;  %v1152_v4 = vpack.c.bf16 %v723_v3, %v721_v2 }
  0xc2   :  { %1039 = vmatpush1.bf16.msra.mxu0 %v1038_v18  ;;  %v712_v18 = vld [vmem:[#allocation7 + $0x1a0] sm:$0xff]  ;;  %v1148_v62 = vpack.c.bf16 %v719_v61, %v717_v60 }
  0xc3   :  { %1041 = vmatprep.subr.bf16.mxu0 %v1040_v13  ;;  %v291_v13 = vld [vmem:[#allocation5 + $0x728] sm:$0xff]  ;;  %v1146_v15 = vpack.c.bf16 %v714_v8, %v712_v18  ;;  %v318_v8 = vld [vmem:[%s1407_s2] sm:$0x3]  ;;  %s1273_s2 = smov [#allocation8]  }
  0xc4   :  { %1143 = vmatpush1.bf16.msra.mxu1 %v1142_v6  ;;  %v1064_v19 = vpack.c.bf16 %v293_v14, %v291_v13  ;;  %v722_v6 = vld [vmem:[#allocation7 + $0x1f0] sm:$0xff]  ;;  %s825_s7 = sshll.u32 %s1273_s2, 4  ;;  %s826_s7 = int_to_ptr.vmem [resolvable:$true] %s825_s7 }
  0xc5   :  { %1145 = vmatprep.subr.bf16.mxu1 %v1144_v16  ;;  %s1239_s8 = scalar_lea.vmem %s826_s7, 64  ;;  %p1244_p11 = scmp.lt.s32.totalorder %s826_s7, %s826_s7 }
  0xc6   :  { %1043 = vmatpush1.bf16.msra.mxu0 %v1042_v22  ;;  %v295_v22 = vld [vmem:[#allocation5 + $0x748] sm:$0xff]  ;;  %p1240_p10 = scmp.ne.s32.totalorder %s826_s7, %s1239_s8  ;;  %p1245_p12 = scmp.lt.s32.totalorder %s1239_s8, %s1239_s8 }
  0xc7   :  { %1045 = vmatprep.subr.bf16.mxu0 %v1044_v47  ;;  %v1068_v25 = vpack.c.bf16 %v297_v23, %v295_v22  ;;  %v296_v47 = vld [vmem:[#allocation5 + $0x750] sm:$0xff] }
  0xc8   :  { %1147 = vmatpush1.bf16.msra.mxu1 %v1146_v15  ;;  %v1070_v29 = vpack.c.bf16 %v296_v47, %v294_v26  ;;  %v724_v23 = vld [vmem:[%s1409_s4] sm:$0x3]  ;;  %p1246_p13 = por %p1245_p12, %p1244_p11 }
  0xc9   :  { %1149 = vmatprep.subr.bf16.mxu1 %v1148_v62 }
  0xca   :  { %1047 = vmatpush1.bf16.msra.mxu0 %v1046_v33  ;;  %v303_v33 = vld [vmem:[#allocation5 + $0x788] sm:$0xff]  ;;  %p1247_p0 = pnand %p1246_p13, %p1240_p10 }
  0xcb   :  { %1049 = vmatprep.subr.bf16.mxu0 %v1048_v39  ;;  %v1076_v37 = vpack.c.bf16 %v305_v34, %v303_v33  ;;  %v304_v39 = vld [vmem:[#allocation5 + $0x790] sm:$0xff] }
  0xcc   :  { %v1078_v42 = vpack.c.bf16 %v304_v39, %v302_v38 }
  0xce   :  { %1051 = vmatpush1.bf16.msra.mxu0 %v1050_v48  ;;  %v311_v48 = vld [vmem:[#allocation5 + $0x7c8] sm:$0xff] }
  0xcf   :  { %1053 = vmatprep.subr.bf16.mxu0 %v1052_v53  ;;  %v1084_v43 = vpack.c.bf16 %v313_v49, %v311_v48  ;;  %v312_v53 = vld [vmem:[#allocation5 + $0x7d0] sm:$0xff] }
  0xd0   :  { %v1086_v56 = vpack.c.bf16 %v312_v53, %v310_v51 }
  0xd2   :  { %1055 = vmatpush1.bf16.msra.mxu0 %v1054_v59  ;;  %v1090_v59 = vpack.c.bf16 %v316_v52, %v314_v58 }
  0xd3   :  { %1057 = vmatprep.subr.bf16.mxu0 %v1056_v0  ;;  %v718_v0 = vld [vmem:[#allocation7 + $0x1d0] sm:$0xff] }
  0xd4   :  { %v1150_v1 = vpack.c.bf16 %v718_v0, %v716_v63 }
  0xd6   :  { %1059 = vmatpush1.bf16.msra.mxu0 %v1058_v7  ;;  %1151 = vmatpush1.bf16.msra.mxu1 %v1150_v1  ;;  %v1154_v7 = vpack.c.bf16 %v722_v6, %v720_v5 }
  0xd7   :  { %1061 = vmatprep.subr.bf16.mxu0 %v1060_v9  ;;  %1153 = vmatprep.subr.bf16.mxu1 %v1152_v4  ;;  %v326_v9 = vsub.s32 1, %v1346_v35 }
  0xd9   :  { %v327_v12 = vrot.slane %v318_v8, %v326_v9 }
  0xda   :  { %1063 = vmatpush1.bf16.msra.mxu0 %v1062_v17  ;;  %1155 = vmatpush1.bf16.msra.mxu1 %v1154_v7 }
  0xdb   :  { %1065 = vmatprep.subr.bf16.mxu0 %v1064_v19 }
  0xde   :  { %1067 = vmatpush1.bf16.msra.mxu0 %v1066_v24 }
  0xdf   :  { %1069 = vmatprep.subr.bf16.mxu0 %v1068_v25  ;;  %v733_v25 = vrot.slane %v724_v23, %v326_v9 }
  0xe2   :  { %1071 = vmatpush1.bf16.msra.mxu0 %v1070_v29 }
  0xe3   :  { %1073 = vmatprep.subr.bf16.mxu0 %v1072_v30 }
  0xe6   :  { %1075 = vmatpush1.bf16.msra.mxu0 %v1074_v10 }
  0xe7   :  { %1077 = vmatprep.subr.bf16.mxu0 %v1076_v37 }
  0xea   :  { %1079 = vmatpush1.bf16.msra.mxu0 %v1078_v42 }
  0xeb   :  { %1081 = vmatprep.subr.bf16.mxu0 %v1080_v44 }
  0xee   :  { %1083 = vmatpush1.bf16.msra.mxu0 %v1082_v50 }
  0xef   :  { %1085 = vmatprep.subr.bf16.mxu0 %v1084_v43 }
  0xf2   :  { %1087 = vmatpush1.bf16.msra.mxu0 %v1086_v56 }
  0xf3   :  { %1089 = vmatprep.subr.bf16.mxu0 %v1088_v57 }
  0xf6   :  { %1091 = vmatpush1.bf16.msra.mxu0 %v1090_v59 }
  0xf9   :  { %652 = vmatmul.mubr.f32.vlgmr.msra.gmra.mrb[0].mxu0 %v1379_v36  ;;  %v322_v36 = vsub.s32 0, %v1346_v35 }
  0xfb   :  { %v323_v11 = vrot.slane %v318_v8, %v322_v36  ;;  %v729_v24 = vrot.slane %v724_v23, %v322_v36 }
 0x166   :  { %v440_v16 = vpop.f32.mrb[0].mxu1 }
 0x167   :  { %v442_v18 = vpop.f32.mrb[1].mxu1  ;;  %v441_v13 = vadd.f32 %v440_v16, %v323_v11 }
 0x168   :  { %v443_v14 = vadd.f32 %v442_v18, %v327_v12 }
 0x1cc   :  { %v653_v15 = vpop.f32.mrb[0].mxu0 }
 0x1cd   :  { %v1157_v17 = vadd.f32 %v653_v15, %v441_v13  ;;  %v655_v19 = vpop.f32.mrb[1].mxu0 }
 0x1ce   :  { %v1159_v20 = vadd.f32 %v655_v19, %v443_v14 }
 0x1cf   :  { %v658_v22 = vmax.f32 %v1157_v17, 0.0 }
 0x1d0   :  { %v659_v21 = vmax.f32 %v1159_v20, 0.0 }
 0x1d2   :  { %800 = vmatprep.mubr.f32.mxu1 %v659_v21 }
 0x1d3   :  { %801 = vmatmul.mubr.f32.vlgmr.msra.gmra.mrb[2].mxu1 %v658_v22 }
 0x2a6   :  { %v802_v26 = vpop.f32.mrb[2].mxu1 }
 0x2a7   :  { %v803_v35 = vadd.f32 %v802_v26, %v729_v24  ;;  %v804_v47 = vpop.f32.mrb[3].mxu1 }
 0x2a8   :  { %v805_v27 = vadd.f32 %v804_v47, %v733_v25 }
 0x2aa   :  { %v809_v28 = vcombine.low %v803_v35, %v805_v27 }
 0x2ac   :  { %835 = vst.sshfl [vmem:[#allocation8] sm:$0x33 pattern:$0x76325410] %v809_v28 }
 0x2ad   :  { %1250 = shalt.err (!%p1247_p0)
}
 0x2ae   :  { %s1251_s10 = scalar_lea.hbm %s1410_s5, 64 }
 0x2af   :  { %p1252_p1 = scmp.ne.s32.totalorder %s1410_s5, %s1251_s10  ;;  %p1255_p2 = scmp.lt.u32.totalorder %s1251_s10, %s1410_s5 }
 0x2b1   :  { %p1257_p3 = pnand %p1255_p2, %p1252_p1 }
 0x2b3   :  { %1260 = shalt.err (!%p1257_p3)
}
 0x2b4   :  { %828 = dma.vmem_to_hbm [thread:$0]  %s826_s7, 64, %s1410_s5, [#allocation4]  }
 0x2b5   :  { %1265 = dma.done.wait [#allocation4], 64  }
 0x2b6   :  { %1266 = vsyncadd [#allocation4], 4294967232 }
 0x2b7   :  { %832 = vsyncpa [#allocation3], 1 }
 0x2b8   :  { %833 = vsyncpa [#allocation6], 1 }
 0x2b9   :  { %834 = vsyncpa [#allocation4], 1 }

</bundles_post_ra>
